<compile_context>
chip_gen: v6e
topology: v6e:2x2x1
jax: 0.10.0
libtpu: 0.0.40
codegen_flags: <defaults>
</compile_context>

<pallas_src>
import functools

import jax
import jax.numpy as jnp
from jax.experimental import pallas as pl
from jax.experimental.pallas import tpu as pltpu

BATCH_SIZE = 16


def _round_up(x, m):
    return ((x + m - 1) // m) * m


def _text_sentiment_kernel(ids_ref, ew_ref, bias_ref, out_ref, acc_ref,
                           *, B, c, TV, inv_c, exact_bf16):
    # ids_ref : [B, c]          int32  token ids (resident across all V tiles)
    # ew_ref  : [TV, num_class] bf16   current V tile of emb_table @ fc_w.T
    # bias_ref: [1, num_class]  f32    fc bias (resident)
    # out_ref : [B, num_class]  f32    written once, at the last V tile
    # acc_ref : [B, num_class]  f32    VMEM accumulator scratch
    vt = pl.program_id(0)

    @pl.when(vt == 0)
    def _():
        acc_ref[...] = jnp.zeros_like(acc_ref)

    ids = ids_ref[...]                                               # [B, c]
    v_iota = vt * TV + jax.lax.broadcasted_iota(jnp.int32, (B, TV), 1)

    # Bag-of-words counts restricted to this V tile:
    #   counts[b, v_local] = #{ j : ids[b, j] == vt*TV + v_local }.
    # Two partial accumulators break the c-deep dependent VPU add chain.
    # Padded vocab rows (>= true V) never match, so they contribute zero.
    half = (c + 1) // 2
    c0 = jnp.zeros((B, TV), jnp.float32)
    c1 = jnp.zeros((B, TV), jnp.float32)
    for j in range(half):
        c0 = c0 + (ids[:, j:j + 1] == v_iota).astype(jnp.float32)
    for j in range(half, c):
        c1 = c1 + (ids[:, j:j + 1] == v_iota).astype(jnp.float32)
    counts = c0 + c1                                                 # [B, TV]

    ew = ew_ref[...]
    if exact_bf16:
        # counts are exact small integers <= c <= 256 -> lossless bf16 LHS.
        counts = counts.astype(jnp.bfloat16)
    else:
        # huge bags: keep an exact f32 LHS (slower MXU path, still correct).
        ew = ew.astype(jnp.float32)

    acc_ref[...] += jnp.dot(counts, ew, preferred_element_type=jnp.float32)

    @pl.when(vt == pl.num_programs(0) - 1)
    def _():
        # 1/c pooling scale applied here (one tiny VPU multiply), then bias.
        out_ref[...] = acc_ref[...] * inv_c + bias_ref[...]


def prepare_text_sentiment_weights(emb_table, fc_w, fc_b, *, tile_v=512):
    """One-time weight preparation (hoisted out of the per-call path).

    Fuses fc into the embedding table: EW = emb_table @ fc_w.T  -> [V, num_class],
    cast to bf16, rows zero-padded up to a multiple of tile_v (no partial grid
    blocks).  The last dim is deliberately NOT padded to 128.
    """
    V, D = emb_table.shape
    num_class = fc_w.shape[0]

    tile_v = _round_up(max(8, min(tile_v, _round_up(V, 8))), 8)
    v_pad = _round_up(V, tile_v)

    ew = emb_table.astype(jnp.float32) @ fc_w.astype(jnp.float32).T   # [V, C]
    ew = jnp.pad(ew, ((0, v_pad - V), (0, 0))).astype(jnp.bfloat16)   # [Vp, C]
    bias = fc_b.astype(jnp.float32).reshape(1, num_class)

    return {"ew": ew, "bias": bias, "tile_v": tile_v, "num_class": num_class}


def text_sentiment_forward(text, weights):
    """Forward pass matching TextSentiment.forward(text)."""
    ew = weights["ew"]
    bias = weights["bias"]
    TV = weights["tile_v"]
    num_class = weights["num_class"]
    v_pad = ew.shape[0]

    N = text.shape[0]
    c = N // BATCH_SIZE
    if c == 0:
        raise ValueError(f"need at least BATCH_SIZE={BATCH_SIZE} tokens, got {N}")
    M = BATCH_SIZE * c
    ids = text[:M].astype(jnp.int32).reshape(BATCH_SIZE, c)          # [B, c]

    exact_bf16 = c <= 256          # bf16 holds integers exactly up to 256
    kernel = functools.partial(
        _text_sentiment_kernel,
        B=BATCH_SIZE, c=c, TV=TV, inv_c=float(1.0 / c), exact_bf16=exact_bf16,
    )

    n_tiles = v_pad // TV
    cost = pl.CostEstimate(
        flops=2 * BATCH_SIZE * v_pad * num_class + BATCH_SIZE * v_pad * c,
        transcendentals=0,
        bytes_accessed=(v_pad * num_class * 2          # bf16 EW stream
                        + BATCH_SIZE * c * 4           # ids
                        + num_class * 4                # bias
                        + BATCH_SIZE * num_class * 4), # output
    )

    out = pl.pallas_call(
        kernel,
        out_shape=jax.ShapeDtypeStruct((BATCH_SIZE, num_class), jnp.float32),
        grid_spec=pltpu.PrefetchScalarGridSpec(
            num_scalar_prefetch=0,
            grid=(n_tiles,),
            in_specs=[
                # ids: resident across the whole reduction.
                pl.BlockSpec((BATCH_SIZE, c), lambda v: (0, 0)),
                # EW: streamed (double-buffered) tile-by-tile over V.
                pl.BlockSpec((TV, num_class), lambda v: (v, 0)),
                # bias: resident.
                pl.BlockSpec((1, num_class), lambda v: (0, 0)),
            ],
            out_specs=pl.BlockSpec((BATCH_SIZE, num_class), lambda v: (0, 0)),
            scratch_shapes=[pltpu.VMEM((BATCH_SIZE, num_class), jnp.float32)],
        ),
        compiler_params=pltpu.CompilerParams(
            dimension_semantics=("arbitrary",),       # reduction axis
            vmem_limit_bytes=32 * 1024 * 1024,        # safe on v5e/v6e/v7x
        ),
        cost_estimate=cost,
    )(ids, ew, bias)
    return out


if __name__ == "__main__":
    vocab_size, embed_dim, num_class = 32, 32, 4
    seq_len = 134  # truncated to BATCH_SIZE * (seq_len // BATCH_SIZE) = 128 tokens

    key = jax.random.PRNGKey(0)
    k_emb, k_w, k_txt = jax.random.split(key, 3)

    initrange = 0.5
    emb_table = jax.random.uniform(
        k_emb, (vocab_size, embed_dim), jnp.float32, -initrange, initrange
    )
    fc_w = jax.random.uniform(
        k_w, (num_class, embed_dim), jnp.float32, -initrange, initrange
    )
    fc_b = jnp.zeros((num_class,), jnp.float32)

    text = jax.random.randint(k_txt, (seq_len,), 0, vocab_size, dtype=jnp.int32)

    # One-time weight prep (would be cached alongside the model parameters).
    # tile_v=16 at this toy vocab gives a 2-step reduction grid so the
    # accumulate / pl.when init / finalize paths are all exercised.
    weights = prepare_text_sentiment_weights(emb_table, fc_w, fc_b, tile_v=16)

    out = jax.block_until_ready(text_sentiment_forward(text, weights))

    # Pure-JAX f32 reference of the PyTorch forward.
    c = seq_len // BATCH_SIZE
    M = BATCH_SIZE * c
    emb = emb_table[text[:M]]                                    # [M, D]
    pooled = emb.reshape(BATCH_SIZE, c, embed_dim).mean(axis=1)  # [B, D]
    ref = pooled @ fc_w.T + fc_b                                 # [B, num_class]
    assert out.shape == (BATCH_SIZE, num_class)
    # bf16 fused table inside the kernel -> bf16-appropriate tolerance.
    assert jnp.allclose(out, ref, atol=2e-2), "mismatch vs reference"

    print("KERNEL_OK")
</pallas_src>

<mosaic_0001>
module attributes {stable_mosaic.version = 11 : i64} {
  func.func @_text_sentiment_kernel(%arg0: i32, %arg1: memref<16x8xi32, #tpu.memory_space<vmem>>, %arg2: memref<16x4xbf16, #tpu.memory_space<vmem>>, %arg3: memref<1x4xf32, #tpu.memory_space<vmem>>, %arg4: memref<16x4xf32, #tpu.memory_space<vmem>>, %arg5: memref<16x4xf32, #tpu.memory_space<vmem>>) attributes {dimension_semantics = [#tpu.dimension_semantics<arbitrary>], iteration_bounds = array<i64: 2>, scalar_prefetch = 0 : i64, scratch_operands = 1 : i64, tpu.core_type = #tpu.core_type<tc>, window_params = [{pipeline_mode = #tpu.pipeline_mode<synchronous>, transform_indices = @transform_0, window_bounds = array<i64: 16, 8>}, {transform_indices = @transform_1, window_bounds = array<i64: 16, 4>}, {pipeline_mode = #tpu.pipeline_mode<synchronous>, transform_indices = @transform_2, window_bounds = array<i64: 1, 4>}, {pipeline_mode = #tpu.pipeline_mode<synchronous>, transform_indices = @transform_3, window_bounds = array<i64: 16, 4>}]} {
    %c0_i32 = arith.constant 0 : i32
    %0 = arith.cmpi eq, %arg0, %c0_i32 : i32
    %1 = arith.extui %0 : i1 to i32
    %c0_i32_0 = arith.constant 0 : i32
    %2 = arith.cmpi ne, %1, %c0_i32_0 : i32
    scf.if %2 {
      %cst_11 = arith.constant 0.000000e+00 : f32
      %68 = vector.broadcast %cst_11 : f32 to vector<16x4xf32>
      %c0_12 = arith.constant 0 : index
      %c0_13 = arith.constant 0 : index
      %69 = vector.load %arg5[%c0_12, %c0_13] : memref<16x4xf32, #tpu.memory_space<vmem>>, vector<16x4xf32>
      tpu.vector_store %arg5[%c0_12, %c0_13], %68 {strides = array<i32>} : memref<16x4xf32, #tpu.memory_space<vmem>>, vector<16x4xf32>,
    } else {
    }
    %c0 = arith.constant 0 : index
    %c0_1 = arith.constant 0 : index
    %3 = vector.load %arg1[%c0, %c0_1] : memref<16x8xi32, #tpu.memory_space<vmem>>, vector<16x8xi32>
    %c16_i32 = arith.constant 16 : i32
    %4 = arith.muli %arg0, %c16_i32 : i32
    %5 = tpu.iota {dimensions = array<i32: 1>} : vector<16x16xi32>
    %6 = vector.broadcast %4 : i32 to vector<16x16xi32>
    %7 = arith.addi %6, %5 : vector<16x16xi32>
    %cst = arith.constant 0.000000e+00 : f32
    %8 = vector.broadcast %cst : f32 to vector<16x16xf32>
    %cst_2 = arith.constant 0.000000e+00 : f32
    %9 = vector.broadcast %cst_2 : f32 to vector<16x16xf32>
    %10 = vector.extract_strided_slice %3 {offsets = [0, 0], sizes = [16, 1], strides = [1, 1]} : vector<16x8xi32> to vector<16x1xi32>
    %11 = vector.broadcast %10 : vector<16x1xi32> to vector<16x16xi32>
    %12 = arith.cmpi eq, %11, %7 : vector<16x16xi32>
    %13 = arith.extui %12 : vector<16x16xi1> to vector<16x16xi32>
    %14 = arith.sitofp %13 : vector<16x16xi32> to vector<16x16xf32>
    %15 = arith.addf %8, %14 : vector<16x16xf32>
    %16 = vector.extract_strided_slice %3 {offsets = [0, 1], sizes = [16, 1], strides = [1, 1]} : vector<16x8xi32> to vector<16x1xi32>
    %17 = vector.broadcast %16 : vector<16x1xi32> to vector<16x16xi32>
    %18 = arith.cmpi eq, %17, %7 : vector<16x16xi32>
    %19 = arith.extui %18 : vector<16x16xi1> to vector<16x16xi32>
    %20 = arith.sitofp %19 : vector<16x16xi32> to vector<16x16xf32>
    %21 = arith.addf %15, %20 : vector<16x16xf32>
    %22 = vector.extract_strided_slice %3 {offsets = [0, 2], sizes = [16, 1], strides = [1, 1]} : vector<16x8xi32> to vector<16x1xi32>
    %23 = vector.broadcast %22 : vector<16x1xi32> to vector<16x16xi32>
    %24 = arith.cmpi eq, %23, %7 : vector<16x16xi32>
    %25 = arith.extui %24 : vector<16x16xi1> to vector<16x16xi32>
    %26 = arith.sitofp %25 : vector<16x16xi32> to vector<16x16xf32>
    %27 = arith.addf %21, %26 : vector<16x16xf32>
    %28 = vector.extract_strided_slice %3 {offsets = [0, 3], sizes = [16, 1], strides = [1, 1]} : vector<16x8xi32> to vector<16x1xi32>
    %29 = vector.broadcast %28 : vector<16x1xi32> to vector<16x16xi32>
    %30 = arith.cmpi eq, %29, %7 : vector<16x16xi32>
    %31 = arith.extui %30 : vector<16x16xi1> to vector<16x16xi32>
    %32 = arith.sitofp %31 : vector<16x16xi32> to vector<16x16xf32>
    %33 = arith.addf %27, %32 : vector<16x16xf32>
    %34 = vector.extract_strided_slice %3 {offsets = [0, 4], sizes = [16, 1], strides = [1, 1]} : vector<16x8xi32> to vector<16x1xi32>
    %35 = vector.broadcast %34 : vector<16x1xi32> to vector<16x16xi32>
    %36 = arith.cmpi eq, %35, %7 : vector<16x16xi32>
    %37 = arith.extui %36 : vector<16x16xi1> to vector<16x16xi32>
    %38 = arith.sitofp %37 : vector<16x16xi32> to vector<16x16xf32>
    %39 = arith.addf %9, %38 : vector<16x16xf32>
    %40 = vector.extract_strided_slice %3 {offsets = [0, 5], sizes = [16, 1], strides = [1, 1]} : vector<16x8xi32> to vector<16x1xi32>
    %41 = vector.broadcast %40 : vector<16x1xi32> to vector<16x16xi32>
    %42 = arith.cmpi eq, %41, %7 : vector<16x16xi32>
    %43 = arith.extui %42 : vector<16x16xi1> to vector<16x16xi32>
    %44 = arith.sitofp %43 : vector<16x16xi32> to vector<16x16xf32>
    %45 = arith.addf %39, %44 : vector<16x16xf32>
    %46 = vector.extract_strided_slice %3 {offsets = [0, 6], sizes = [16, 1], strides = [1, 1]} : vector<16x8xi32> to vector<16x1xi32>
    %47 = vector.broadcast %46 : vector<16x1xi32> to vector<16x16xi32>
    %48 = arith.cmpi eq, %47, %7 : vector<16x16xi32>
    %49 = arith.extui %48 : vector<16x16xi1> to vector<16x16xi32>
    %50 = arith.sitofp %49 : vector<16x16xi32> to vector<16x16xf32>
    %51 = arith.addf %45, %50 : vector<16x16xf32>
    %52 = vector.extract_strided_slice %3 {offsets = [0, 7], sizes = [16, 1], strides = [1, 1]} : vector<16x8xi32> to vector<16x1xi32>
    %53 = vector.broadcast %52 : vector<16x1xi32> to vector<16x16xi32>
    %54 = arith.cmpi eq, %53, %7 : vector<16x16xi32>
    %55 = arith.extui %54 : vector<16x16xi1> to vector<16x16xi32>
    %56 = arith.sitofp %55 : vector<16x16xi32> to vector<16x16xf32>
    %57 = arith.addf %51, %56 : vector<16x16xf32>
    %58 = arith.addf %33, %57 : vector<16x16xf32>
    %c0_3 = arith.constant 0 : index
    %c0_4 = arith.constant 0 : index
    %59 = vector.load %arg2[%c0_3, %c0_4] : memref<16x4xbf16, #tpu.memory_space<vmem>>, vector<16x4xbf16>
    %60 = arith.truncf %58 : vector<16x16xf32> to vector<16x16xbf16>
    %c0_5 = arith.constant 0 : index
    %c0_6 = arith.constant 0 : index
    %61 = vector.load %arg5[%c0_5, %c0_6] : memref<16x4xf32, #tpu.memory_space<vmem>>, vector<16x4xf32>
    %cst_7 = arith.constant dense<0.000000e+00> : vector<16x4xf32>
    %62 = tpu.matmul %60, %59, %cst_7 {dimension_numbers = #tpu.dot_dimension_numbers<[1], [0], [0], [1], [0, 0, 1, 1], [], []>} : vector<16x16xbf16>, vector<16x4xbf16>, vector<16x4xf32> -> vector<16x4xf32>
    %63 = arith.addf %61, %62 : vector<16x4xf32>
    %c0_8 = arith.constant 0 : index
    %c0_9 = arith.constant 0 : index
    %64 = vector.load %arg5[%c0_8, %c0_9] : memref<16x4xf32, #tpu.memory_space<vmem>>, vector<16x4xf32>
    tpu.vector_store %arg5[%c0_8, %c0_9], %63 {strides = array<i32>} : memref<16x4xf32, #tpu.memory_space<vmem>>, vector<16x4xf32>,
    %c1_i32 = arith.constant 1 : i32
    %65 = arith.cmpi eq, %arg0, %c1_i32 : i32
    %66 = arith.extui %65 : i1 to i32
    %c0_i32_10 = arith.constant 0 : i32
    %67 = arith.cmpi ne, %66, %c0_i32_10 : i32
    scf.if %67 {
      %c0_11 = arith.constant 0 : index
      %c0_12 = arith.constant 0 : index
      %68 = vector.load %arg5[%c0_11, %c0_12] : memref<16x4xf32, #tpu.memory_space<vmem>>, vector<16x4xf32>
      %cst_13 = arith.constant 1.250000e-01 : f32
      %69 = vector.broadcast %cst_13 : f32 to vector<16x4xf32>
      %70 = arith.mulf %68, %69 : vector<16x4xf32>
      %c0_14 = arith.constant 0 : index
      %c0_15 = arith.constant 0 : index
      %71 = vector.load %arg3[%c0_14, %c0_15] : memref<1x4xf32, #tpu.memory_space<vmem>>, vector<1x4xf32>
      %72 = vector.broadcast %71 : vector<1x4xf32> to vector<16x4xf32>
      %73 = arith.addf %70, %72 : vector<16x4xf32>
      %c0_16 = arith.constant 0 : index
      %c0_17 = arith.constant 0 : index
      %74 = vector.load %arg4[%c0_16, %c0_17] : memref<16x4xf32, #tpu.memory_space<vmem>>, vector<16x4xf32>
      tpu.vector_store %arg4[%c0_16, %c0_17], %73 {strides = array<i32>} : memref<16x4xf32, #tpu.memory_space<vmem>>, vector<16x4xf32>,
    } else {
    }
    return
  }
  func.func @transform_0(%arg0: i32) -> (i32, i32) {
    %c0_i32 = arith.constant 0 : i32
    %c0_i32_0 = arith.constant 0 : i32
    %c0_i32_1 = arith.constant 0 : i32
    return %c0_i32, %c0_i32_0 : i32, i32
  }
  func.func @transform_1(%arg0: i32) -> (i32, i32) {
    %c0_i32 = arith.constant 0 : i32
    %c0_i32_0 = arith.constant 0 : i32
    return %arg0, %c0_i32 : i32, i32
  }
  func.func @transform_2(%arg0: i32) -> (i32, i32) {
    %c0_i32 = arith.constant 0 : i32
    %c0_i32_0 = arith.constant 0 : i32
    %c0_i32_1 = arith.constant 0 : i32
    return %c0_i32, %c0_i32_0 : i32, i32
  }
  func.func @transform_3(%arg0: i32) -> (i32, i32) {
    %c0_i32 = arith.constant 0 : i32
    %c0_i32_0 = arith.constant 0 : i32
    %c0_i32_1 = arith.constant 0 : i32
    return %c0_i32, %c0_i32_0 : i32, i32
  }
}

</mosaic_0001>

<bundles_post_ra>
// kernel: tpu_custom_call.1
= control target key start
LH: loop header
LB: loop body
LE: loop exit
PB: predicated region body
PF: predicated region fallthrough
CT: control target
= control target key end

     0   :  { %s505_s12 = smov 0   ;;  %s565_s0 = inlined_call_operand.vmem [shape: s32[16,8], index: 0, kind: input, shape index: {}]   ;;  %s566_s1 = inlined_call_operand.vmem [shape: bf16[32,4], index: 1, kind: input, shape index: {}]   ;;  %s567_s2 = inlined_call_operand.vmem [shape: f32[1,4], index: 2, kind: input, shape index: {}]   ;;  %s568_s3 = inlined_call_operand.vmem [shape: f32[16,4], index: 3, kind: output, shape index: {}]  }
   0x1 LB: > { %s511_s13 = sadd.s32 4294967295, %s472_s12   ;;  %p398_p0 = scmp.ge.s32.totalorder %s472_s12, 1  ;;  %s472_s12 = sphi %s505_s12, %s13_s12  }
   0x2   : > { %p133_p1 = scmp.lt.s32.totalorder %s472_s12, 3 }
   0x4   : > { %p134_p2 = pnand %p398_p0, %p133_p1 }
   0x5   : > { %s399_s14 = sshll.u32 (!%p134_p2), %s511_s13, 1  ;;  %p401_p4 = scmp.ne.s32.totalorder (!%p134_p2), %s511_s13, 0 }
   0x6   : > { %137 = sbr.rel (%p134_p2) target bundleno = 406 (0x196), region = 32  ;;  %p153_p3 = scmp.lt.s32.totalorder (!%p134_p2), %s399_s14, 3 }
   0xb   : > { %s570_s14 = smov (!%p153_p3, %s399_s14), 3  ;;  %162 = sbr.rel (%p401_p4) target bundleno = 18 (0x12), region = 36 }
   0xc   : > { %s400_s15 = sshll.u32 %s570_s14, 2 }
   0xd   : > { %s519_s18 = scalar_lea.vmem %s566_s1, %s400_s15 }
  0x10   : > { %vm163_vm0 = vcmask 31744   ;;  %v474_v0 = vmov 0.0  }
  0x11   : > { %164 = vst.msk [vmem:[#allocation2] sm:$0xff] %vm163_vm0, %v474_v0  ;;  %165 = vst.msk [vmem:[#allocation2 + $0x8] sm:$0xff] %vm163_vm0, %v474_v0 }
  0x12 PF: > { %v166_v1 = vld [vmem:[%s565_s0] sm:$0xff]  ;;  %v475_v2 = vmov 1   ;;  %v476_v3 = vmov 0   ;;  %v167_v4 = vld [vmem:[%s565_s0 + $0x8] sm:$0xff]  ;;  %v477_v5 = vmov 0.0   ;;  %v478_v6 = vmov 4  }
  0x13   : > { %453 = vset.pattern.permute.xlu1 %v475_v2  ;;  %452 = vset.pattern.permute.xlu0 %v476_v3  ;;  %v479_v7 = vmov 5   ;;  %v480_v8 = vmov 2   ;;  %v481_v9 = vmov 6   ;;  %v482_v10 = vmov 3   ;;  %v465_v12 = vld [vmem:[%s519_s18] sm:$0xff]   ;;  %s402_s23 = sshll.u32 %s511_s13, 4 }
  0x14   : > { %188 = vperm.xlu1 %453, %v166_v1   ;;  %174 = vperm.xlu0 %452, %v166_v1   ;;  %v483_v11 = vmov 7   ;;  %vm484_vm1 = vmmov 0   ;;  %v169_v21 = vlaneseq  ;;  %v171_v24 = vstv %s402_s23  ;;  %p421_p5 = scmp.ne.s32.totalorder %s511_s13, 1 }
  0x15   : > { %427 = vmatprep.subr.bf16.mxu0 %v477_v5  ;;  %429 = vmatprep.mubr.msk.bf16.mxu0 %vm484_vm1, %v477_v5 }
  0x16   : > { %428 = vmatpush3.bf16.msra.mxu0 %v465_v12  ;;  %v170_v23 = vand.u32 127, %v169_v21 }
  0x18   : > { %191 = vperm.xlu1 %453, %v167_v4   ;;  %177 = vperm.xlu0 %452, %v167_v4   ;;  %v172_v27 = vadd.s32 %v171_v24, %v170_v23  ;;  %v290_v0 = vld [vmem:[#allocation2] sm:$0xff] }
  0x1c   : > { %455 = vset.pattern.permute.xlu1 %v478_v6  ;;  %454 = vset.pattern.permute.xlu0 %v478_v6 }
  0x1d   : > { %233 = vperm.xlu1 %455, %v167_v4   ;;  %230 = vperm.xlu0 %454, %v166_v1  }
  0x21   : > { %456 = vset.pattern.permute.xlu1 %v479_v7  ;;  %457 = vset.pattern.permute.xlu0 %v479_v7 }
  0x22   : > { %244 = vperm.xlu1 %456, %v166_v1   ;;  %247 = vperm.xlu0 %457, %v167_v4  }
  0x26   : > { %458 = vset.pattern.permute.xlu1 %v480_v8  ;;  %459 = vset.pattern.permute.xlu0 %v481_v9 }
  0x27   : > { %202 = vperm.xlu1 %458, %v166_v1   ;;  %258 = vperm.xlu0 %459, %v166_v1  }
  0x2b   : > { %205 = vperm.xlu1 %458, %v167_v4   ;;  %462 = vset.pattern.permute.xlu0 %v482_v10 }
  0x2c   : > { %219 = vperm.xlu0 %462, %v167_v4  }
  0x2f   : > { %460 = vset.pattern.permute.xlu1 %v481_v9 }
  0x30   : > { %261 = vperm.xlu1 %460, %v167_v4   ;;  %464 = vset.pattern.permute.xlu0 %v483_v11 }
  0x34   : > { %461 = vset.pattern.permute.xlu1 %v482_v10 }
  0x35   : > { %216 = vperm.xlu1 %461, %v166_v1  }
  0x39   : > { %463 = vset.pattern.permute.xlu1 %v483_v11 }
  0x3a   : > { %272 = vperm.xlu1 %463, %v166_v1  }
  0x3e   : > { %275 = vperm.xlu1 %463, %v167_v4   ;;  %v291_v4 = vld [vmem:[#allocation2 + $0x8] sm:$0xff] }
  0x8f   : > { %v189_v13 = vpop.permute.xlu1 %188  ;;  %v175_v16 = vpop.permute.xlu0 %174 }
  0x90   : > { %vm193_vm4 = vcmp.eq.s32.totalorder %v189_v13, %v172_v27  ;;  %vm179_vm7 = vcmp.eq.s32.totalorder %v175_v16, %v172_v27 }
  0x91   : > { %v405_v32 = vsel %vm193_vm4, 1.0, %v477_v5  ;;  %v403_v36 = vsel %vm179_vm7, 1.0, %v477_v5 }
  0x92   : > { %v199_v47 = vadd.f32 %v405_v32, %v403_v36 }
  0x93   : > { %v192_v14 = vpop.permute.xlu1 %191  ;;  %v178_v18 = vpop.permute.xlu0 %177 }
  0x94   : > { %vm194_vm2 = vcmp.eq.s32.totalorder %v192_v14, %v172_v27  ;;  %vm180_vm3 = vcmp.eq.s32.totalorder %v178_v18, %v172_v27 }
  0x95   : > { %v406_v30 = vsel %vm194_vm2, 1.0, %v477_v5  ;;  %v404_v31 = vsel %vm180_vm3, 1.0, %v477_v5  ;;  %vm298_vm2 = vcmask 130048   ;;  %vm345_vm3 = vcmask 31744  }
  0x96   : > { %v200_v37 = vadd.f32 %v406_v30, %v404_v31 }
  0x98   : > { %v234_v15 = vpop.permute.xlu1 %233  ;;  %v231_v20 = vpop.permute.xlu0 %230 }
  0x99   : > { %vm235_vm5 = vcmp.eq.s32.totalorder %v231_v20, %v172_v27  ;;  %vm236_vm11 = vcmp.eq.s32.totalorder %v234_v15, %v172_v27 }
  0x9a   : > { %v411_v33 = vsel %vm235_vm5, 1.0, %v477_v5  ;;  %v412_v43 = vsel %vm236_vm11, 1.0, %v477_v5 }
  0x9d   : > { %v245_v17 = vpop.permute.xlu1 %244  ;;  %v248_v25 = vpop.permute.xlu0 %247 }
  0x9e   : > { %vm249_vm6 = vcmp.eq.s32.totalorder %v245_v17, %v172_v27  ;;  %vm250_vm8 = vcmp.eq.s32.totalorder %v248_v25, %v172_v27 }
  0x9f   : > { %v413_v34 = vsel %vm249_vm6, 1.0, %v477_v5  ;;  %v414_v38 = vsel %vm250_vm8, 1.0, %v477_v5 }
  0xa0   : > { %v255_v42 = vadd.f32 %v413_v34, %v411_v33  ;;  %v256_v48 = vadd.f32 %v414_v38, %v412_v43 }
  0xa2   : > { %v203_v19 = vpop.permute.xlu1 %202  ;;  %v259_v28 = vpop.permute.xlu0 %258 }
  0xa3   : > { %vm263_vm9 = vcmp.eq.s32.totalorder %v259_v28, %v172_v27  ;;  %vm207_vm12 = vcmp.eq.s32.totalorder %v203_v19, %v172_v27 }
  0xa4   : > { %v415_v39 = vsel %vm263_vm9, 1.0, %v477_v5  ;;  %v407_v44 = vsel %vm207_vm12, 1.0, %v477_v5 }
  0xa5   : > { %v269_v49 = vadd.f32 %v415_v39, %v255_v42  ;;  %v213_v54 = vadd.f32 %v407_v44, %v199_v47 }
  0xa6   : > { %v206_v22 = vpop.permute.xlu1 %205 }
  0xa7   : > { %vm208_vm10 = vcmp.eq.s32.totalorder %v206_v22, %v172_v27  ;;  %v220_v35 = vpop.permute.xlu0 %219 }
  0xa8   : > { %v408_v40 = vsel %vm208_vm10, 1.0, %v477_v5  ;;  %vm222_vm14 = vcmp.eq.s32.totalorder %v220_v35, %v172_v27 }
  0xa9   : > { %v214_v50 = vadd.f32 %v408_v40, %v200_v37  ;;  %v410_v51 = vsel %vm222_vm14, 1.0, %v477_v5 }
  0xab   : > { %v262_v26 = vpop.permute.xlu1 %261  ;;  %v228_v58 = vadd.f32 %v410_v51, %v214_v50 }
  0xac   : > { %vm264_vm13 = vcmp.eq.s32.totalorder %v262_v26, %v172_v27 }
  0xad   : > { %v416_v45 = vsel %vm264_vm13, 1.0, %v477_v5 }
  0xae   : > { %v270_v55 = vadd.f32 %v416_v45, %v256_v48 }
  0xb0   : > { %v217_v29 = vpop.permute.xlu1 %216 }
  0xb1   : > { %vm221_vm15 = vcmp.eq.s32.totalorder %v217_v29, %v172_v27 }
  0xb2   : > { %v409_v52 = vsel %vm221_vm15, 1.0, %v477_v5 }
  0xb3   : > { %v227_v59 = vadd.f32 %v409_v52, %v213_v54 }
  0xb5   : > { %v273_v41 = vpop.permute.xlu1 %272 }
  0xb6   : > { %vm277_vm0 = vcmp.eq.s32.totalorder %v273_v41, %v172_v27 }
  0xb7   : > { %v417_v46 = vsel %vm277_vm0, 1.0, %v477_v5 }
  0xb8   : > { %v283_v56 = vadd.f32 %v417_v46, %v269_v49 }
  0xb9   : > { %v276_v53 = vpop.permute.xlu1 %275 }
  0xba   : > { %vm278_vm1 = vcmp.eq.s32.totalorder %v276_v53, %v172_v27  ;;  %v285_v61 = vadd.f32 %v283_v56, %v227_v59 }
  0xbb   : > { %v418_v57 = vsel %vm278_vm1, 1.0, %v477_v5 }
  0xbc   : > { %v284_v60 = vadd.f32 %v418_v57, %v270_v55 }
  0xbe   : > { %v286_v62 = vadd.f32 %v284_v60, %v228_v58 }
  0xc0   : > { %v289_v63 = vpack.c.bf16 %v286_v62, %v285_v61 }
  0xc2   : > { %430 = vmatmul.mubr.msk.bf16.vlgmr.msra.gmra.mxu0 %vm298_vm2, %v289_v63 }
 0x182   : > { %v336_v1 = vpop.f32.mrf.mxu0 }
 0x183   : > { %v343_v2 = vadd.f32 %v336_v1, %v290_v0 }
 0x184   : > { %v431_v3 = vpop.f32.mrf.mxu0 }
 0x185   : > { %346 = vst.msk [vmem:[#allocation2] sm:$0xff] %vm345_vm3, %v343_v2  ;;  %351 = sbr.rel (%p421_p5) target bundleno = 406 (0x196), region = 40 }
 0x186   : > { %v339_v6 = vpop.f32.mrf.mxu0 }
 0x187   : > { %v344_v7 = vadd.f32 %v339_v6, %v291_v4 }
 0x188   : > { %v432_v8 = vpop.f32.mrf.mxu0 }
 0x189   : > { %347 = vst.msk [vmem:[#allocation2 + $0x8] sm:$0xff] %vm345_vm3, %v344_v7 }
 0x18a   : > { %v422_v9 = vld [vmem:[%s567_s2] ss:$0 sm:$0xff] }
 0x18c   : > { %v352_v5 = vld [vmem:[#allocation2] sm:$0xff] }
 0x18d   : > { %v354_v11 = vmul.f32 0.125, %v352_v5 }
 0x18f   : > { %v363_v13 = vadd.f32 %v422_v9, %v354_v11 }
 0x190   : > { %v353_v10 = vld [vmem:[#allocation2 + $0x8] sm:$0xff] }
 0x191   : > { %v355_v12 = vmul.f32 0.125, %v353_v10  ;;  %365 = vst.msk [vmem:[%s568_s3] sm:$0xff] %vm345_vm3, %v363_v13 }
 0x193   : > { %v364_v14 = vadd.f32 %v422_v9, %v355_v12 }
 0x195   : > { %366 = vst.msk [vmem:[%s568_s3 + $0x8] sm:$0xff] %vm345_vm3, %v364_v14 }
 0x196 PF: > { %s13_s12 = sadd.s32 1, %s472_s12  }
 0x197   : > { %p10_p6 = scmp.ge.s32.totalorder %s13_s12, 4  }
 0x199   :  { %12 = sbr.rel (!%p10_p6) target bundleno = 1 (0x1), region = 66 }

</bundles_post_ra>
